<compile_context>
chip_gen: v5e
topology: v5e:2x2
jax: 0.10.0
libtpu: 0.0.40
codegen_flags: <defaults>
</compile_context>

<pallas_src>
import jax
import jax.numpy as jnp
from jax.experimental import pallas as pl
from jax.experimental.pallas import tpu as pltpu

LANE = 128                        # lane width the tiny (width-2) weight is padded to
_VMEM_BUDGET = 40 * 1024 * 1024   # buffer budget: fits v7x's 64 MiB physical VMEM


def _nsp_kernel(x_ref, w_ref, b_ref, o_ref):
    # x_ref: (TB, H); w_ref: (H, 128) zero-padded W^T; b_ref: (1, 2) f32;
    # o_ref: (TB, 2).
    acc = jnp.dot(x_ref[...], w_ref[...],
                  preferred_element_type=jnp.float32)          # MXU, f32 accumulate
    n_out = o_ref.shape[-1]
    o_ref[...] = (acc[:, :n_out] + b_ref[...]).astype(o_ref.dtype)


def pad_nsp_weight(weight, dtype):
    """One-time (parameter-load time) padding of W^T to a lane-dense (H,128) slab."""
    n_out, H = weight.shape
    w_t = jnp.zeros((H, LANE), dtype=dtype)
    return w_t.at[:, :n_out].set(weight.T.astype(dtype))


def _pick_batch_tile(B, H, itemsize, n_out, block_rows):
    """Largest batch tile (multiple of 8) that keeps pipeline buffers in budget."""
    # Double-buffered resident weight + bias blocks (weight DMA happens once).
    fixed = 2 * H * LANE * itemsize + 2 * LANE * 4
    # Double-buffered streamed x tile + double-buffered narrow output tile.
    per_row = 2 * H * itemsize + 2 * n_out * itemsize
    cap = max(8, (_VMEM_BUDGET - fixed) // per_row)
    cap = (cap // 8) * 8
    tb = min(block_rows, cap)
    if B <= tb:
        # Small/medium batch: split into two balanced tiles when the tile can
        # remain a multiple of 8, so grid >= 2 and both v7x TCs get work.
        half = -(-B // 2)            # cdiv(B, 2)
        half = -(-half // 8) * 8     # round up to multiple of 8
        tb = half if (8 <= half < B) else B
    return tb, fixed + per_row * tb


def next_sentence_pred(x, w_padded, bias, *, block_rows=2048):
    """x: (B, H); w_padded: (H, 128) from pad_nsp_weight; bias: (2,).

    Returns logits (B, 2) in x.dtype (nn.Linear forward semantics).
    """
    B, H = x.shape
    n_out = bias.shape[0]
    itemsize = jnp.dtype(x.dtype).itemsize

    b2d = bias.astype(jnp.float32).reshape(1, n_out)   # tiny, no padding needed

    tb, vmem_bytes = _pick_batch_tile(B, H, itemsize, n_out, block_rows)
    grid = (pl.cdiv(B, tb),)

    cost = pl.CostEstimate(
        flops=2 * B * H * n_out,
        transcendentals=0,
        bytes_accessed=B * H * itemsize        # stream x once
        + H * LANE * itemsize                  # resident weight (read once)
        + B * n_out * itemsize                 # narrow output writeback
        + n_out * 4,
    )

    return pl.pallas_call(
        _nsp_kernel,
        out_shape=jax.ShapeDtypeStruct((B, n_out), x.dtype),
        grid_spec=pl.GridSpec(
            grid=grid,
            in_specs=[
                pl.BlockSpec((tb, H), lambda i: (i, 0)),       # x: streamed
                pl.BlockSpec((H, LANE), lambda i: (0, 0)),     # W^T: resident
                pl.BlockSpec((1, n_out), lambda i: (0, 0)),    # bias: resident
            ],
            out_specs=pl.BlockSpec((tb, n_out), lambda i: (i, 0)),
        ),
        compiler_params=pltpu.CompilerParams(
            dimension_semantics=("parallel",),                 # shards over v7x TCs
            # Explicit scoped-VMEM limit so the large tile lands on v5e/v6e
            # while staying safely below v7x's 64 MiB physical VMEM.
            vmem_limit_bytes=int(min(max(vmem_bytes + (4 << 20), 32 << 20),
                                     48 << 20)),
        ),
        cost_estimate=cost,
    )(x, w_padded, b2d)


if __name__ == "__main__":
    key = jax.random.PRNGKey(0)
    k_x, k_w, k_b = jax.random.split(key, 3)

    batch = 2
    num_inputs = 32  # hidden size

    x = jax.random.normal(k_x, (batch, num_inputs), dtype=jnp.float32)
    # Deterministic parameter init (mimics nn.Linear's uniform init scale).
    bound = 1.0 / jnp.sqrt(num_inputs)
    weight = jax.random.uniform(k_w, (2, num_inputs), dtype=jnp.float32,
                                minval=-bound, maxval=bound)
    bias = jax.random.uniform(k_b, (2,), dtype=jnp.float32,
                              minval=-bound, maxval=bound)

    # Hoisted, one-time weight padding (parameter-load time, not per call).
    w_padded = pad_nsp_weight(weight, x.dtype)

    out = next_sentence_pred(x, w_padded, bias)
    jax.block_until_ready(out)

    # Reference check in plain JAX.
    ref = x @ weight.T + bias
    assert out.shape == (batch, 2)
    assert jnp.allclose(out, ref, atol=1e-5, rtol=1e-5)

    print("KERNEL_OK")
</pallas_src>

<mosaic_0001>
module attributes {stable_mosaic.version = 11 : i64} {
  func.func @_nsp_kernel(%arg0: i32, %arg1: memref<2x32xf32, #tpu.memory_space<vmem>>, %arg2: memref<32x128xf32, #tpu.memory_space<vmem>>, %arg3: memref<1x2xf32, #tpu.memory_space<vmem>>, %arg4: memref<2x2xf32, #tpu.memory_space<vmem>>) attributes {dimension_semantics = [#tpu.dimension_semantics<parallel>], iteration_bounds = array<i64: 1>, scalar_prefetch = 0 : i64, scratch_operands = 0 : i64, tpu.core_type = #tpu.core_type<tc>, window_params = [{transform_indices = @transform_0, window_bounds = array<i64: 2, 32>}, {pipeline_mode = #tpu.pipeline_mode<synchronous>, transform_indices = @transform_1, window_bounds = array<i64: 32, 128>}, {pipeline_mode = #tpu.pipeline_mode<synchronous>, transform_indices = @transform_2, window_bounds = array<i64: 1, 2>}, {transform_indices = @transform_3, window_bounds = array<i64: 2, 2>}]} {
    %c0 = arith.constant 0 : index
    %c0_0 = arith.constant 0 : index
    %0 = vector.load %arg1[%c0, %c0_0] : memref<2x32xf32, #tpu.memory_space<vmem>>, vector<2x32xf32>
    %c0_1 = arith.constant 0 : index
    %c0_2 = arith.constant 0 : index
    %1 = vector.load %arg2[%c0_1, %c0_2] : memref<32x128xf32, #tpu.memory_space<vmem>>, vector<32x128xf32>
    %cst = arith.constant dense<0.000000e+00> : vector<2x128xf32>
    %2 = tpu.matmul %0, %1, %cst {dimension_numbers = #tpu.dot_dimension_numbers<[1], [0], [0], [1], [0, 0, 1, 1], [], []>} : vector<2x32xf32>, vector<32x128xf32>, vector<2x128xf32> -> vector<2x128xf32>
    %3 = vector.extract_strided_slice %2 {offsets = [0, 0], sizes = [2, 2], strides = [1, 1]} : vector<2x128xf32> to vector<2x2xf32>
    %c0_3 = arith.constant 0 : index
    %c0_4 = arith.constant 0 : index
    %4 = vector.load %arg3[%c0_3, %c0_4] : memref<1x2xf32, #tpu.memory_space<vmem>>, vector<1x2xf32>
    %5 = vector.broadcast %4 : vector<1x2xf32> to vector<2x2xf32>
    %6 = arith.addf %3, %5 : vector<2x2xf32>
    %c0_5 = arith.constant 0 : index
    %c0_6 = arith.constant 0 : index
    %7 = vector.load %arg4[%c0_5, %c0_6] : memref<2x2xf32, #tpu.memory_space<vmem>>, vector<2x2xf32>
    tpu.vector_store %arg4[%c0_5, %c0_6], %6 {strides = array<i32>} : memref<2x2xf32, #tpu.memory_space<vmem>>, vector<2x2xf32>,
    return
  }
  func.func @transform_0(%arg0: i32) -> (i32, i32) {
    %c0_i32 = arith.constant 0 : i32
    %c0_i32_0 = arith.constant 0 : i32
    return %arg0, %c0_i32 : i32, i32
  }
  func.func @transform_1(%arg0: i32) -> (i32, i32) {
    %c0_i32 = arith.constant 0 : i32
    %c0_i32_0 = arith.constant 0 : i32
    %c0_i32_1 = arith.constant 0 : i32
    return %c0_i32, %c0_i32_0 : i32, i32
  }
  func.func @transform_2(%arg0: i32) -> (i32, i32) {
    %c0_i32 = arith.constant 0 : i32
    %c0_i32_0 = arith.constant 0 : i32
    %c0_i32_1 = arith.constant 0 : i32
    return %c0_i32, %c0_i32_0 : i32, i32
  }
  func.func @transform_3(%arg0: i32) -> (i32, i32) {
    %c0_i32 = arith.constant 0 : i32
    %c0_i32_0 = arith.constant 0 : i32
    return %arg0, %c0_i32 : i32, i32
  }
}

</mosaic_0001>

<bundles_post_ra>
// kernel: tpu_custom_call.1
= control target key start
LH: loop header
LB: loop body
LE: loop exit
PB: predicated region body
PF: predicated region fallthrough
CT: control target
= control target key end

     0   :  { %8 = vsyncpa [#allocation3], 0  ;;  %s221_s0 = inlined_call_operand.hbm [shape: f32[2,32], index: 0, kind: input, shape index: {}]   ;;  %s222_s1 = inlined_call_operand.hbm [shape: f32[32,128], index: 1, kind: input, shape index: {}]   ;;  %s223_s2 = inlined_call_operand.vmem [shape: f32[1,2], index: 2, kind: input, shape index: {}]   ;;  %s224_s3 = inlined_call_operand.hbm [shape: f32[2,2], index: 3, kind: output, shape index: {}]  }
   0x1   :  { %9 = vsyncpa [#allocation6], 0 }
   0x2   :  { %10 = vsyncpa [#allocation4], 0  ;;  %s16_s14 = sshll.u32 %s221_s0, 4  ;;  %s184_s15 = smov [#allocation2]   ;;  %s17_s14 = int_to_ptr.hbm [resolvable:$true] %s16_s14 }
   0x3   :  { %s18_s16 = sshll.u32 %s184_s15, 4  ;;  %s26_s19 = sshll.u32 %s222_s1, 4  ;;  %s19_s16 = int_to_ptr.vmem [resolvable:$true] %s18_s16  ;;  %s27_s19 = int_to_ptr.hbm [resolvable:$true] %s26_s19 }
   0x4   :  { %21 = dma.hbm_to_vmem [thread:$0]  %s17_s14, 32, %s19_s16, [#allocation3]  }
   0x5   :  { %s185_s20 = smov [#allocation5]   ;;  %s186_s22 = smov 128  }
   0x6   :  { %s28_s21 = sshll.u32 %s185_s20, 4  ;;  %s187_s23 = smov 8   ;;  %s29_s21 = int_to_ptr.vmem [resolvable:$true] %s28_s21 }
   0x7   :  { %34 = dma.hbm_to_vmem [thread:$0]  %s27_s19, 512, %s29_s21, [#allocation6], %s186_s22, %s186_s22, %s187_s23  }
   0x8   :  { %178 = dma.done.wait [#allocation3], 32  }
   0x9   :  { %179 = vsyncadd [#allocation3], 4294967264 }
   0xa   :  { %180 = dma.done.wait [#allocation6], 512  }
   0xb   :  { %181 = vsyncadd [#allocation6], 4294966784  ;;  %v49_v0 = vld [vmem:[#allocation5 + $0x18] sm:$0xff]  ;;  %v48_v1 = vld [vmem:[#allocation5 + $0x10] sm:$0xff]  ;;  %vm50_vm0 = vcmask 261120   ;;  %s188_s24 = smov [#allocation7]  }
   0xc   :  { %66 = vmatpush.msra.mxu0 %v49_v0  ;;  %v47_v2 = vld [vmem:[#allocation5 + $0x8] sm:$0xff]  ;;  %v46_v3 = vld [vmem:[#allocation5] sm:$0xff]  ;;  %v45_v4 = vld [vmem:[#allocation2] sm:$0x3]  ;;  %s86_s25 = sshll.u32 %s188_s24, 4  ;;  %s88_s28 = sshll.u32 %s224_s3, 4  ;;  %s87_s25 = int_to_ptr.vmem [resolvable:$true] %s86_s25  ;;  %s89_s28 = int_to_ptr.hbm [resolvable:$true] %s88_s28 }
   0xd   :  { %v105_v5 = vld [vmem:[%s223_s2] ss:$0 sm:$0xff]  ;;  %vm79_vm1 = vcmask 9216  }
   0xe   :  { %67 = vmatpush.msra.mxu0 %v48_v1 }
  0x10   :  { %68 = vmatpush.msra.mxu0 %v47_v2 }
  0x12   :  { %69 = vmatpush.msra.mxu0 %v46_v3 }
  0x13   :  { %99 = vmatmul.msk.f32.vlgmr.msra.gmra.mxu0 %vm50_vm0, %v45_v4 }
  0x90   :  { %v71_v6 = vpop.f32.mrf.mxu0 }
  0x91   :  { %v78_v7 = vadd.f32 %v105_v5, %v71_v6 }
  0x93   :  { %80 = vst.msk [vmem:[#allocation7] sm:$0x3] %vm79_vm1, %v78_v7 }
  0x94   :  { %91 = dma.vmem_to_hbm [thread:$0]  %s87_s25, 32, %s89_s28, [#allocation4]  }
  0x95   :  { %182 = dma.done.wait [#allocation4], 32  }
  0x96   :  { %183 = vsyncadd [#allocation4], 4294967264 }
  0x97   :  { %96 = vsyncpa [#allocation3], 1 }
  0x98   :  { %97 = vsyncpa [#allocation6], 1 }
  0x99   :  { %98 = vsyncpa [#allocation4], 1 }

</bundles_post_ra>
